<compile_context>
chip_gen: v7x
topology: tpu7x:2x2x1
jax: 0.10.0
libtpu: 0.0.40
codegen_flags: <defaults>
</compile_context>

<pallas_src>
import functools

import jax
import jax.numpy as jnp
from jax import lax
from jax.experimental import pallas as pl
from jax.experimental.pallas import tpu as pltpu


def _round_up(n, m):
    return ((n + m - 1) // m) * m


def ncm_kernel(x_ref, c_ref, csq_ref, wx_ref, o_ref, xs_ref, xsq_ref,
               *, apply_sqrt=True):
    # x_ref:   [tm, D]   raw features (input dtype)
    # c_ref:   [tn, D]   pre-scaled centroids (= centroids / T)
    # csq_ref: [1, tn]   precomputed ||centroids/(2T)||^2, f32, lane-major
    # wx_ref:  [1, D]    1 / (2T), f32
    # o_ref:   [tm, tn]  output tile
    # xs_ref:  [tm, D]   scratch: x/(2T) (MXU operand dtype), resident over j
    # xsq_ref: [tm, 1]   scratch: ||x/(2T)||^2, f32, resident over j

    # x-side work once per batch tile (scratch persists across the class axis).
    @pl.when(pl.program_id(1) == 0)
    def _():
        xw = x_ref[...].astype(jnp.float32) * wx_ref[...]          # [tm, D] f32
        xsq_ref[...] = jnp.sum(xw * xw, axis=-1, keepdims=True)    # [tm, 1]
        xs_ref[...] = xw.astype(xs_ref.dtype)

    # Cross term on the MXU: (x/(2T)) @ (c/T)^T == 2 * (x/(2T)) . (c/(2T)).
    cross2 = lax.dot_general(
        xs_ref[...], c_ref[...], (((1,), (1,)), ((), ())),
        preferred_element_type=jnp.float32)                         # [tm, tn]

    d2 = (xsq_ref[...] - cross2) + csq_ref[...]                     # [tm, tn]
    d2 = jnp.maximum(d2, 0.0)           # cancellation guard before sqrt
    if apply_sqrt:
        o_ref[...] = (-jnp.sqrt(d2)).astype(o_ref.dtype)
    else:
        # Monotone transform (-d2_orig / 4); only valid if callers just rank.
        o_ref[...] = (-d2).astype(o_ref.dtype)


def _vmem_estimate(tm, tn, d, x_bytes, c_bytes, o_bytes):
    # Double-buffered pipeline buffers + persistent scratch.
    dbl = 2 * (tm * d * x_bytes + tn * d * c_bytes + tn * 4 + d * 4
               + tm * tn * o_bytes)
    scratch = tm * d * x_bytes + tm * 4
    return dbl + scratch


def ncm_classifier_forward(x, centroids, T, *, tm_max=512, tn_max=512,
                           skip_sqrt=False,
                           vmem_budget_bytes=12 * 1024 * 1024):
    """Returns (-dists/2, None) matching NcmClassifier.forward.

    x: [B, D], centroids: [C, D], T: [D].
    Full feature dim D is kept in each block (fine for typical feat_dim); add a
    K-reduction grid axis only if D grows very large.
    """
    B, D = x.shape
    C, Dc = centroids.shape
    assert D == Dc and T.shape == (D,)

    out_dtype = jnp.promote_types(x.dtype, jnp.float32)   # PyTorch promotes vs f32 T
    o_bytes = jnp.dtype(out_dtype).itemsize
    x_bytes = jnp.dtype(x.dtype).itemsize
    c_bytes = jnp.dtype(centroids.dtype).itemsize

    # ---- Hoisted centroid-side preprocessing (centroids & T are parameters) ----
    t_f32 = T.astype(jnp.float32)
    c_f32 = centroids.astype(jnp.float32)
    c2 = (c_f32 / t_f32[None, :]).astype(centroids.dtype)          # [C, D]
    c_half = c_f32 / (2.0 * t_f32[None, :])
    c_sq = jnp.sum(c_half * c_half, axis=-1, keepdims=True).T      # [1, C] f32
    wx = (1.0 / (2.0 * t_f32)).reshape(1, D)                        # [1, D] f32

    # ---- Tile sizes ----
    tm = min(tm_max, _round_up(B, 8 if B <= 128 else 128))   # 128-mult for big B (v5e MXU)
    tn = min(tn_max, _round_up(C, 128))                       # lane-dense output stores
    # VMEM budget (v7x default scoped limit is the smallest): shrink if needed.
    while _vmem_estimate(tm, tn, D, x_bytes, c_bytes, o_bytes) > vmem_budget_bytes and tn > 128:
        tn //= 2
    while _vmem_estimate(tm, tn, D, x_bytes, c_bytes, o_bytes) > vmem_budget_bytes and tm > 8:
        tm = max(8, _round_up(tm // 2, 8))

    b_pad = _round_up(B, tm)
    c_pad = _round_up(C, tn)
    # v7x megacore: keep >= 2 blocks along the parallel batch axis if the grid
    # would otherwise collapse to (1, 1).
    if b_pad // tm == 1 and c_pad // tn == 1 and b_pad >= 16 and b_pad % 16 == 0:
        tm = b_pad // 2

    # Only pad x when the batch really needs it (avoids an extra HBM pass).
    if b_pad != B:
        x = jnp.pad(x, ((0, b_pad - B), (0, 0)))
    # Centroid-side padding rides along with the hoisted (parameter) prep.
    if c_pad != C:
        c2 = jnp.pad(c2, ((0, c_pad - C), (0, 0)))
        c_sq = jnp.pad(c_sq, ((0, 0), (0, c_pad - C)))

    grid = (b_pad // tm, c_pad // tn)

    cost = pl.CostEstimate(
        flops=2 * b_pad * c_pad * D,
        transcendentals=b_pad * c_pad,
        bytes_accessed=(b_pad * D * x_bytes
                        + grid[0] * c_pad * D * c_bytes
                        + b_pad * c_pad * o_bytes),
    )

    logits = pl.pallas_call(
        functools.partial(ncm_kernel, apply_sqrt=not skip_sqrt),
        out_shape=jax.ShapeDtypeStruct((b_pad, c_pad), out_dtype),
        grid=grid,
        in_specs=[
            # x tile resident while class tiles stream on the inner axis.
            pl.BlockSpec((tm, D), lambda i, j: (i, 0)),
            pl.BlockSpec((tn, D), lambda i, j: (j, 0)),
            pl.BlockSpec((1, tn), lambda i, j: (0, j)),   # class norms, lane-major
            pl.BlockSpec((1, D), lambda i, j: (0, 0)),    # 1/(2T)
        ],
        out_specs=pl.BlockSpec((tm, tn), lambda i, j: (i, j)),
        scratch_shapes=[
            pltpu.VMEM((tm, D), x.dtype),        # x/(2T), persists across class axis
            pltpu.VMEM((tm, 1), jnp.float32),    # ||x/(2T)||^2
        ],
        compiler_params=pltpu.CompilerParams(
            # Class axis is "arbitrary": x-side scratch persists across it.
            dimension_semantics=("parallel", "arbitrary"),
        ),
        cost_estimate=cost,
    )(x, c2, c_sq, wx)

    if b_pad != B or c_pad != C:
        logits = logits[:B, :C]
    return logits, None


def ncm_reference(x, centroids, T):
    diff = (x[:, None, :].astype(jnp.float32)
            - centroids[None, :, :].astype(jnp.float32)) / T[None, None, :].astype(jnp.float32)
    dists = jnp.sqrt(jnp.sum(jnp.square(diff), axis=-1))
    return -dists / 2.0


if __name__ == "__main__":
    # Small deterministic shapes consistent with the module (feat_dim=64 default,
    # reduced num_classes for a quick example).
    B, num_classes, feat_dim = 8, 16, 64

    key = jax.random.PRNGKey(0)
    kx, kc = jax.random.split(key)
    x = jax.random.normal(kx, (B, feat_dim), dtype=jnp.float32)
    centroids = jax.random.normal(kc, (num_classes, feat_dim), dtype=jnp.float32)
    # Parameter T initialized exactly as in __init__: torch.ones(feat_dim)
    T = jnp.ones((feat_dim,), dtype=jnp.float32)

    logits, aux = ncm_classifier_forward(x, centroids, T)
    logits = jax.block_until_ready(logits)
    assert aux is None  # second return of forward() is always None

    ref = ncm_reference(x, centroids, T)
    assert logits.shape == (B, num_classes)
    assert jnp.allclose(logits, ref, atol=1e-4, rtol=1e-5), (
        float(jnp.max(jnp.abs(logits - ref))))

    print("KERNEL_OK")
</pallas_src>

<mosaic_0001>
module attributes {stable_mosaic.version = 11 : i64} {
  func.func @ncm_kernel(%arg0: i32, %arg1: i32, %arg2: memref<8x64xf32, #tpu.memory_space<vmem>>, %arg3: memref<128x64xf32, #tpu.memory_space<vmem>>, %arg4: memref<1x128xf32, #tpu.memory_space<vmem>>, %arg5: memref<1x64xf32, #tpu.memory_space<vmem>>, %arg6: memref<8x128xf32, #tpu.memory_space<vmem>>, %arg7: memref<8x64xf32, #tpu.memory_space<vmem>>, %arg8: memref<8x1xf32, #tpu.memory_space<vmem>>) attributes {dimension_semantics = [#tpu.dimension_semantics<parallel>, #tpu.dimension_semantics<arbitrary>], iteration_bounds = array<i64: 1, 1>, scalar_prefetch = 0 : i64, scratch_operands = 2 : i64, tpu.core_type = #tpu.core_type<tc>, window_params = [{transform_indices = @transform_0, window_bounds = array<i64: 8, 64>}, {transform_indices = @transform_1, window_bounds = array<i64: 128, 64>}, {transform_indices = @transform_2, window_bounds = array<i64: 1, 128>}, {pipeline_mode = #tpu.pipeline_mode<synchronous>, transform_indices = @transform_3, window_bounds = array<i64: 1, 64>}, {transform_indices = @transform_4, window_bounds = array<i64: 8, 128>}]} {
    %c0_i32 = arith.constant 0 : i32
    %0 = arith.cmpi eq, %arg1, %c0_i32 : i32
    %1 = arith.extui %0 : i1 to i32
    %c0_i32_0 = arith.constant 0 : i32
    %2 = arith.cmpi ne, %1, %c0_i32_0 : i32
    scf.if %2 {
      %c0_12 = arith.constant 0 : index
      %c0_13 = arith.constant 0 : index
      %18 = vector.load %arg2[%c0_12, %c0_13] : memref<8x64xf32, #tpu.memory_space<vmem>>, vector<8x64xf32>
      %c0_14 = arith.constant 0 : index
      %c0_15 = arith.constant 0 : index
      %19 = vector.load %arg5[%c0_14, %c0_15] : memref<1x64xf32, #tpu.memory_space<vmem>>, vector<1x64xf32>
      %20 = vector.broadcast %19 : vector<1x64xf32> to vector<8x64xf32>
      %21 = arith.mulf %18, %20 : vector<8x64xf32>
      %22 = arith.mulf %21, %21 : vector<8x64xf32>
      %cst_16 = arith.constant dense<0.000000e+00> : vector<8xf32>
      %23 = vector.multi_reduction <add>, %22, %cst_16 [1] : vector<8x64xf32> to vector<8xf32>
      %24 = vector.shape_cast %23 : vector<8xf32> to vector<8x1xf32>
      %c0_17 = arith.constant 0 : index
      %c0_18 = arith.constant 0 : index
      %25 = vector.load %arg8[%c0_17, %c0_18] : memref<8x1xf32, #tpu.memory_space<vmem>>, vector<8x1xf32>
      tpu.vector_store %arg8[%c0_17, %c0_18], %24 {strides = array<i32>} : memref<8x1xf32, #tpu.memory_space<vmem>>, vector<8x1xf32>,
      %c0_19 = arith.constant 0 : index
      %c0_20 = arith.constant 0 : index
      %26 = vector.load %arg7[%c0_19, %c0_20] : memref<8x64xf32, #tpu.memory_space<vmem>>, vector<8x64xf32>
      tpu.vector_store %arg7[%c0_19, %c0_20], %21 {strides = array<i32>} : memref<8x64xf32, #tpu.memory_space<vmem>>, vector<8x64xf32>,
    } else {
    }
    %c0 = arith.constant 0 : index
    %c0_1 = arith.constant 0 : index
    %3 = vector.load %arg7[%c0, %c0_1] : memref<8x64xf32, #tpu.memory_space<vmem>>, vector<8x64xf32>
    %c0_2 = arith.constant 0 : index
    %c0_3 = arith.constant 0 : index
    %4 = vector.load %arg3[%c0_2, %c0_3] : memref<128x64xf32, #tpu.memory_space<vmem>>, vector<128x64xf32>
    %cst = arith.constant dense<0.000000e+00> : vector<8x128xf32>
    %5 = tpu.matmul %3, %4, %cst {dimension_numbers = #tpu.dot_dimension_numbers<[1], [1], [0], [0], [0, 0, 1, 0], [], []>} : vector<8x64xf32>, vector<128x64xf32>, vector<8x128xf32> -> vector<8x128xf32>
    %c0_4 = arith.constant 0 : index
    %c0_5 = arith.constant 0 : index
    %6 = vector.load %arg8[%c0_4, %c0_5] : memref<8x1xf32, #tpu.memory_space<vmem>>, vector<8x1xf32>
    %7 = vector.broadcast %6 : vector<8x1xf32> to vector<8x128xf32>
    %8 = arith.subf %7, %5 : vector<8x128xf32>
    %c0_6 = arith.constant 0 : index
    %c0_7 = arith.constant 0 : index
    %9 = vector.load %arg4[%c0_6, %c0_7] : memref<1x128xf32, #tpu.memory_space<vmem>>, vector<1x128xf32>
    %10 = vector.broadcast %9 : vector<1x128xf32> to vector<8x128xf32>
    %11 = arith.addf %8, %10 : vector<8x128xf32>
    %cst_8 = arith.constant 0.000000e+00 : f32
    %12 = vector.broadcast %cst_8 : f32 to vector<8x128xf32>
    %13 = arith.maximumf %11, %12 : vector<8x128xf32>
    %14 = math.sqrt %13 : vector<8x128xf32>
    %cst_9 = arith.constant 0.000000e+00 : f32
    %15 = vector.broadcast %cst_9 : f32 to vector<8x128xf32>
    %16 = arith.subf %15, %14 : vector<8x128xf32>
    %c0_10 = arith.constant 0 : index
    %c0_11 = arith.constant 0 : index
    %17 = vector.load %arg6[%c0_10, %c0_11] : memref<8x128xf32, #tpu.memory_space<vmem>>, vector<8x128xf32>
    tpu.vector_store %arg6[%c0_10, %c0_11], %16 {strides = array<i32>} : memref<8x128xf32, #tpu.memory_space<vmem>>, vector<8x128xf32>,
    return
  }
  func.func @transform_0(%arg0: i32, %arg1: i32) -> (i32, i32) {
    %c0_i32 = arith.constant 0 : i32
    %c0_i32_0 = arith.constant 0 : i32
    return %arg0, %c0_i32 : i32, i32
  }
  func.func @transform_1(%arg0: i32, %arg1: i32) -> (i32, i32) {
    %c0_i32 = arith.constant 0 : i32
    %c0_i32_0 = arith.constant 0 : i32
    return %arg1, %c0_i32 : i32, i32
  }
  func.func @transform_2(%arg0: i32, %arg1: i32) -> (i32, i32) {
    %c0_i32 = arith.constant 0 : i32
    %c0_i32_0 = arith.constant 0 : i32
    return %c0_i32, %arg1 : i32, i32
  }
  func.func @transform_3(%arg0: i32, %arg1: i32) -> (i32, i32) {
    %c0_i32 = arith.constant 0 : i32
    %c0_i32_0 = arith.constant 0 : i32
    %c0_i32_1 = arith.constant 0 : i32
    return %c0_i32, %c0_i32_0 : i32, i32
  }
  func.func @transform_4(%arg0: i32, %arg1: i32) -> (i32, i32) {
    %c0_i32 = arith.constant 0 : i32
    return %arg0, %arg1 : i32, i32
  }
}

</mosaic_0001>

<bundles_post_ra>
// kernel: tpu_custom_call.1
= control target key start
LH: loop header
LB: loop body
LE: loop exit
PB: predicated region body
PF: predicated region fallthrough
CT: control target
= control target key end

     0   :  { %vm32_vm0 = vcmask 523264   ;;  %v352_v5 = vmov 0.0|0.0   ;;  %vm353_vm2 = vmmov 0   ;;  %v354_v8 = vmov 0.0   ;;  %s476_s0 = inlined_call_operand.vmem [shape: f32[8,64], index: 0, kind: input, shape index: {}]   ;;  %s477_s1 = inlined_call_operand.vmem [shape: f32[128,64], index: 1, kind: input, shape index: {}]   ;;  %s478_s2 = inlined_call_operand.vmem [shape: f32[1,128], index: 2, kind: input, shape index: {}]   ;;  %s479_s3 = inlined_call_operand.vmem [shape: f32[1,64], index: 3, kind: input, shape index: {}]   ;;  %s480_s4 = inlined_call_operand.hbm [shape: f32[8,128], index: 4, kind: output, shape index: {}]  }
   0x1   :  { %v22_v0 = vld [vmem:[%s476_s0] sm:$0xff]  ;;  %vm393_vm1 = vmpackc.low %vm32_vm0, %vm32_vm0  ;;  %288 = vmatprep.subr.bf16.mxu0 %v352_v5  ;;  %v41_v6 = vld [vmem:[%s477_s1 + $0x8] sm:$0xff]  ;;  %285 = vmatprep.mubr.msk.f32.mxu0 %vm353_vm2, %v354_v8 }
   0x2   :  { %v217_v1 = vld [vmem:[%s479_s3] ss:$0 sm:$0xff]  ;;  %v42_v11 = vld [vmem:[%s477_s1 + $0x10] sm:$0xff]  ;;  %v43_v12 = vld [vmem:[%s477_s1 + $0x18] sm:$0xff] }
   0x3   :  { %v40_v2 = vld [vmem:[%s477_s1] sm:$0xff]  ;;  %v30_v3 = vmul.f32 %v217_v1, %v22_v0 }
   0x4   :  { %v289_v7 = vpack.c.bf16 %v41_v6, %v40_v2 }
   0x5   :  { %v31_v9 = vmul.f32 %v30_v3, %v30_v3  ;;  %38 = vst.msk [vmem:[#allocation2] sm:$0xff] %vm32_vm0, %v30_v3 }
   0x6   :  { %291 = vmatpush3.bf16.xpose.msk.msra.mxu0 %vm393_vm1, %v289_v7 }
   0x7   :  { %v33_v10 = vsel %vm32_vm0, %v31_v9, 0.0  ;;  %292 = vmatprep.subr.bf16.mxu0 %v352_v5 }
   0x8   :  { %34 = vadd.xlane.f32.xlu0 %v33_v10 }
   0x9   :  { %9 = vsyncpa [#allocation5], 0  ;;  %v293_v13 = vpack.c.bf16 %v43_v12, %v42_v11  ;;  %v44_v14 = vld [vmem:[%s477_s1 + $0x20] sm:$0xff]  ;;  %v45_v15 = vld [vmem:[%s477_s1 + $0x28] sm:$0xff]  ;;  %v355_v19 = vmov 0   ;;  %vm36_vm3 = vcmask 7168  }
   0xa   :  { %v297_v16 = vpack.c.bf16 %v45_v15, %v44_v14  ;;  %v46_v17 = vld [vmem:[%s477_s1 + $0x30] sm:$0xff]  ;;  %v47_v18 = vld [vmem:[%s477_s1 + $0x38] sm:$0xff]  ;;  %325 = vset.pattern.permute.xlu0 %v355_v19  ;;  %v48_v21 = vld [vmem:[%s477_s1 + $0x40] sm:$0xff] }
   0xb   :  { %v301_v20 = vpack.c.bf16 %v47_v18, %v46_v17  ;;  %v49_v22 = vld [vmem:[%s477_s1 + $0x48] sm:$0xff]  ;;  %v50_v24 = vld [vmem:[%s477_s1 + $0x50] sm:$0xff]  ;;  %v51_v25 = vld [vmem:[%s477_s1 + $0x58] sm:$0xff] }
   0xc   :  { %v305_v23 = vpack.c.bf16 %v49_v22, %v48_v21  ;;  %v309_v26 = vpack.c.bf16 %v51_v25, %v50_v24  ;;  %v52_v27 = vld [vmem:[%s477_s1 + $0x60] sm:$0xff]  ;;  %v53_v28 = vld [vmem:[%s477_s1 + $0x68] sm:$0xff]  ;;  %v54_v30 = vld [vmem:[%s477_s1 + $0x70] sm:$0xff] }
   0xd   :  { %v313_v29 = vpack.c.bf16 %v53_v28, %v52_v27  ;;  %v55_v31 = vld [vmem:[%s477_s1 + $0x78] sm:$0xff]  ;;  %v39_v33 = vld [vmem:[#allocation2] sm:$0xff]  ;;  %s356_s1 = smov [#allocation4]  }
   0xe   :  { %295 = vmatpush3.bf16.xpose.msk.msra.mxu0 %vm393_vm1, %v293_v13  ;;  %v317_v32 = vpack.c.bf16 %v55_v31, %v54_v30  ;;  %v235_v38 = vld [vmem:[%s478_s2] ss:$0 sm:$0xff]  ;;  %s209_s23 = sshll.u32 %s356_s1, 4  ;;  %s210_s23 = int_to_ptr.vmem [resolvable:$true] %s209_s23 }
   0xf   :  { %296 = vmatprep.subr.bf16.mxu0 %v352_v5  ;;  %s328_s24 = scalar_lea.vmem %s210_s23, 128  ;;  %p333_p1 = scmp.lt.s32.totalorder %s210_s23, %s210_s23 }
  0x10   :  { %p329_p0 = scmp.ne.s32.totalorder %s210_s23, %s328_s24  ;;  %p334_p2 = scmp.lt.s32.totalorder %s328_s24, %s328_s24 }
  0x12   :  { %p335_p3 = por %p334_p2, %p333_p1 }
  0x14   :  { %p336_p4 = pnand %p335_p3, %p329_p0 }
  0x16   :  { %299 = vmatpush3.bf16.xpose.msk.msra.mxu0 %vm393_vm1, %v297_v16 }
  0x17   :  { %300 = vmatprep.subr.bf16.mxu0 %v352_v5 }
  0x1e   :  { %303 = vmatpush3.bf16.xpose.msk.msra.mxu0 %vm393_vm1, %v301_v20 }
  0x1f   :  { %304 = vmatprep.subr.bf16.mxu0 %v352_v5 }
  0x26   :  { %307 = vmatpush3.bf16.xpose.msk.msra.mxu0 %vm393_vm1, %v305_v23 }
  0x27   :  { %308 = vmatprep.subr.bf16.mxu0 %v352_v5 }
  0x2e   :  { %311 = vmatpush3.bf16.xpose.msk.msra.mxu0 %vm393_vm1, %v309_v26 }
  0x2f   :  { %312 = vmatprep.subr.bf16.mxu0 %v352_v5 }
  0x36   :  { %315 = vmatpush3.bf16.xpose.msk.msra.mxu0 %vm393_vm1, %v313_v29 }
  0x37   :  { %316 = vmatprep.subr.bf16.mxu0 %v352_v5 }
  0x3e   :  { %319 = vmatpush3.bf16.xpose.msk.msra.mxu0 %vm393_vm1, %v317_v32 }
  0x45   :  { %286 = vmatmul.mubr.msk.f32.vlgmr.msra.gmra.mrb[0].mxu0 %vm32_vm0, %v39_v33 }
  0x95   :  { %v35_v34 = vpop.xlane.xlu0 %34 }
  0x96   :  { %37 = vst.msk [vmem:[#allocation3] sm:$0xff] %vm36_vm3, %v35_v34 }
  0x9d   :  { %v178_v35 = vld [vmem:[#allocation3] sm:$0xff] }
  0x9e   :  { %181 = vperm.xlu0 %325, %v178_v35  }
 0x118   :  { %v174_v36 = vpop.f32.mrb[0].mxu0 }
 0x119   :  { %v287_v37 = vpop.f32.mrb[1].mxu0 }
 0x11d   :  { %v182_v39 = vpop.permute.xlu0 %181 }
 0x11e   :  { %v184_v40 = vsub.f32 %v182_v39, %v174_v36 }
 0x120   :  { %v192_v41 = vadd.f32 %v235_v38, %v184_v40 }
 0x122   :  { %v193_v42 = vmax.f32 %v192_v41, 0.0 }
 0x124   :  { %326 = vrsqrt.f32 %v193_v42  ;;  %vm196_vm4 = vcmp.eq.f32.partialorder %v193_v42, inf  ;;  %v199_v45 = vand.u32 2147483648, %v193_v42  ;;  %vm198_vm5 = vcmp.eq.f32.partialorder %v193_v42, 0.0 }
 0x12e   :  { %v327_v43 = vpop.eup %326 }
 0x12f   :  { %v195_v44 = vmul.f32 %v327_v43, %v193_v42 }
 0x131   :  { %v197_v46 = vsel %vm196_vm4, %v193_v42, %v195_v44 }
 0x132   :  { %v200_v47 = vsel %vm198_vm5, %v199_v45, %v197_v46 }
 0x133   :  { %v201_v48 = vsub.f32 0.0, %v200_v47 }
 0x135   :  { %202 = vst [vmem:[#allocation4] sm:$0xff] %v201_v48 }
 0x136   :  { %339 = shalt.err (!%p336_p4)
}
 0x137   :  { %s340_s26 = scalar_lea.hbm %s480_s4, 128 }
 0x138   :  { %p341_p5 = scmp.ne.s32.totalorder %s480_s4, %s340_s26  ;;  %p344_p6 = scmp.lt.u32.totalorder %s340_s26, %s480_s4 }
 0x13a   :  { %p346_p7 = pnand %p344_p6, %p341_p5 }
 0x13c   :  { %349 = shalt.err (!%p346_p7)
}
 0x13d   :  { %212 = dma.vmem_to_hbm [thread:$0]  %s210_s23, 128, %s480_s4, [#allocation5]  }
 0x13e   :  { %350 = dma.done.wait [#allocation5], 128  }
 0x13f   :  { %351 = vsyncadd [#allocation5], 4294967168 }
 0x140   :  { %216 = vsyncpa [#allocation5], 1 }

</bundles_post_ra>
